<compile_context>
chip_gen: v5e
topology: v5e:2x2
jax: 0.10.0
libtpu: 0.0.40
codegen_flags: <defaults>
</compile_context>

<pallas_src>
import functools

import jax
import jax.numpy as jnp
from jax.experimental import pallas as pl
from jax.experimental.pallas import tpu as pltpu


def _hm_loss_kernel(n_rows, row_tile, needs_mask, single_tile,
                    vis_ref, pre_ref, gt_ref, out_ref):
    """One grid step: SmoothL1(beta=1) partial sum over a (TR, HW) slab of joint rows.

    vis_ref: (num_tiles*TR, 1) per-row target weight, resident (constant index_map)
    pre_ref: (TR, HW)          predicted heatmap rows (native dtype)
    gt_ref:  (TR, HW)          target heatmap rows (native dtype)
    out_ref: (1, HW)           f32 lane-dense per-tile partial sum
    """
    r = pl.program_id(0)

    if single_tile:
        w = vis_ref[...].astype(jnp.float32)                        # (TR, 1)
    else:
        start = pl.multiple_of(r * row_tile, 8)                     # TR % 8 == 0 here
        w = vis_ref[pl.ds(start, row_tile), :].astype(jnp.float32)  # (TR, 1)

    d = (pre_ref[...].astype(jnp.float32)
         - gt_ref[...].astype(jnp.float32)) * w                     # fold weight into diff
    ad = jnp.abs(d)
    m = jnp.minimum(ad, 1.0)
    sl1 = m * (ad - 0.5 * m)                                        # Huber beta=1 (min form)

    if needs_mask:
        tr = pre_ref.shape[0]
        row_ids = r * tr + jax.lax.broadcasted_iota(jnp.int32, (tr, 1), 0)
        sl1 = jnp.where(row_ids < n_rows, sl1, 0.0)                 # drop padded (garbage) rows

    out_ref[...] = jnp.sum(sl1, axis=0, keepdims=True)              # (1, HW) partial, no carry


def _block_budget():
    """(per-input-block bytes, scoped VMEM limit), sized per TPU generation."""
    try:
        vmem_cap = pltpu.get_tpu_info().vmem_capacity_bytes
    except Exception:  # be conservative if the query is unavailable
        vmem_cap = 64 * 1024 * 1024
    if vmem_cap >= 96 * 1024 * 1024:             # v5e / v6e: 128 MiB per TensorCore
        return 6 * 1024 * 1024, 64 * 1024 * 1024
    return 4 * 1024 * 1024, 40 * 1024 * 1024     # v7x: 64 MiB per TensorCore


def _pick_row_tile(n_rows, hw, itemsize, per_block_bytes):
    """Rows per grid step + whether the ragged final tile needs an in-kernel mask."""
    cap = max(1, per_block_bytes // max(1, hw * itemsize))
    if cap >= n_rows or n_rows <= 8:
        return n_rows, False                      # single full-extent tile (always legal)
    align = max(8, 32 // itemsize)                # sublane packing: 8 f32 / 16 bf16 / 32 int8
    cap_aligned = max(8, (cap // align) * align)
    best = None
    for tr in range(cap_aligned, 7, -8):          # prefer an exact divisor -> no mask ops
        if n_rows % tr == 0:
            if tr % align == 0:
                return tr, False
            if best is None:
                best = tr
    if best is not None:
        return best, False
    return cap_aligned, True                      # ragged final tile, mask in-kernel


def joints_mse_loss(pre, pre_hm, target_hm, target, target_vis, loss_norm,
                    *, use_target_weight=True, lamda=0.1,
                    use_pallas=None, block_bytes=None):
    f32 = jnp.float32
    B, J, _ = pre.shape
    H, W = pre_hm.shape[2], pre_hm.shape[3]
    HW = H * W
    BJ = B * J

    # ---- 'arg_loss' branch: O(B*J) scalar-ish work, plain JAX (hoisted out of kernel) ----
    vis = target_vis.astype(f32)                                        # (B, J, 1)
    diff = jnp.abs(pre.astype(f32) - target.astype(f32)) * vis          # (B, J, 2)
    loss_coord = jnp.mean((diff[:, :, 0] + diff[:, :, 1]) * 0.5)
    loss_norm_red = jnp.mean(loss_norm.astype(f32) * vis[:, :, 0])

    # ---- 'hm_loss' branch: streaming SmoothL1 over the heatmaps ----
    if use_target_weight:
        vis_rows = target_vis.reshape(BJ, 1)
    else:
        vis_rows = jnp.ones((BJ, 1), f32)

    itemsize = max(jnp.dtype(pre_hm.dtype).itemsize,
                   jnp.dtype(target_hm.dtype).itemsize)
    inv_denom = 1.0 / float(B * HW)

    if use_pallas is None:
        # Tiny heatmaps: kernel launch + pipeline prologue dominates the math.
        use_pallas = 2 * BJ * HW * itemsize >= (1 << 20)

    prehm_rows = pre_hm.reshape(BJ, HW)       # contiguous reshape only: no transpose, no cast
    tgthm_rows = target_hm.reshape(BJ, HW)

    if not use_pallas:
        w = vis_rows.astype(f32)
        d = (prehm_rows.astype(f32) - tgthm_rows.astype(f32)) * w
        ad = jnp.abs(d)
        m = jnp.minimum(ad, 1.0)
        loss_hm = jnp.sum(m * (ad - 0.5 * m)) * inv_denom
    else:
        per_block, vmem_limit = _block_budget()
        if block_bytes is not None:
            per_block = block_bytes
        TR, needs_mask = _pick_row_tile(BJ, HW, itemsize, per_block)
        num_tiles = pl.cdiv(BJ, TR)
        single_tile = num_tiles == 1

        # Pad the tiny per-row weight so the in-kernel pl.ds slice never reads OOB.
        pad = num_tiles * TR - BJ
        if pad:
            vis_rows = jnp.concatenate(
                [vis_rows, jnp.zeros((pad, 1), vis_rows.dtype)], axis=0)
        vis_len = num_tiles * TR

        kernel = functools.partial(_hm_loss_kernel, BJ, TR, needs_mask, single_tile)

        partials = pl.pallas_call(
            kernel,
            out_shape=jax.ShapeDtypeStruct((num_tiles, HW), f32),
            grid=(num_tiles,),
            in_specs=[
                pl.BlockSpec((vis_len, 1), lambda r: (0, 0)),    # resident per-row weight
                pl.BlockSpec((TR, HW), lambda r: (r, 0)),        # predicted heatmap rows
                pl.BlockSpec((TR, HW), lambda r: (r, 0)),        # target heatmap rows
            ],
            out_specs=pl.BlockSpec((1, HW), lambda r: (r, 0)),   # lane-dense per-tile partial
            compiler_params=pltpu.CompilerParams(
                dimension_semantics=("parallel",),               # no carry -> megacore sharding
                vmem_limit_bytes=vmem_limit),
        )(vis_rows, prehm_rows, tgthm_rows)

        loss_hm = jnp.sum(partials) * inv_denom                  # tiny reduce in the wrapper

    loss = loss_coord + lamda * loss_norm_red + loss_hm
    return loss, loss_coord, loss_hm, loss_norm_red


def _reference(pre, pre_hm, target_hm, target, target_vis, loss_norm, lamda=0.1):
    diff = jnp.abs(pre - target) * target_vis
    loss_coord = jnp.mean((diff[:, :, 0] + diff[:, :, 1]) / 2.0)
    loss_norm_red = jnp.mean(loss_norm * target_vis[..., 0])
    B, J = pre_hm.shape[0], pre_hm.shape[1]
    p = pre_hm.reshape(B, J, -1) * target_vis
    g = target_hm.reshape(B, J, -1) * target_vis
    d = p - g
    ad = jnp.abs(d)
    sl1 = jnp.where(ad < 1.0, 0.5 * d * d, ad - 0.5)
    loss_hm = jnp.sum(jnp.mean(sl1, axis=(0, 2)))
    loss = loss_coord + lamda * loss_norm_red + loss_hm
    return loss, loss_coord, loss_hm, loss_norm_red


if __name__ == "__main__":
    def run_case(key, B, J, H, W, block_bytes=None, use_pallas=True):
        k = jax.random.split(key, 6)
        pre = jax.random.normal(k[0], (B, J, 2), jnp.float32)        # output[0]: coords
        pre_hm = jax.random.normal(k[1], (B, J, H, W), jnp.float32)  # output[1]: heatmaps
        target_hm = jax.random.uniform(k[2], (B, J, H, W), dtype=jnp.float32)
        target = jax.random.normal(k[3], (B, J, 2), jnp.float32)
        target_vis = (jax.random.uniform(k[4], (B, J, 1)) > 0.3).astype(jnp.float32)
        loss_norm = jax.random.uniform(k[5], (B, J), dtype=jnp.float32)

        outs = joints_mse_loss(pre, pre_hm, target_hm, target, target_vis, loss_norm,
                               use_target_weight=True, lamda=0.1,
                               use_pallas=use_pallas, block_bytes=block_bytes)
        outs = jax.block_until_ready(outs)
        refs = _reference(pre, pre_hm, target_hm, target, target_vis, loss_norm, lamda=0.1)
        for got, want in zip(outs, refs):
            assert abs(float(got) - float(want)) < 1e-4, (float(got), float(want))

    root = jax.random.PRNGKey(0)
    ks = jax.random.split(root, 4)
    # (a) nominal small shape, single-tile Pallas path.
    run_case(ks[0], B=2, J=4, H=16, W=16)
    # (b) multi-tile path with an exact-divisor row tile (forced small block budget).
    run_case(ks[1], B=4, J=6, H=16, W=16, block_bytes=8 * 256 * 4)
    # (c) ragged final tile: iota mask + padded resident-weight dynamic slice.
    run_case(ks[2], B=2, J=9, H=16, W=16, block_bytes=8 * 256 * 4)
    # (d) tiny-input jnp fallback (auto heuristic skips the kernel launch).
    run_case(ks[3], B=2, J=4, H=16, W=16, use_pallas=None)

    print("KERNEL_OK")
</pallas_src>

<mosaic_0001>
module attributes {stable_mosaic.version = 11 : i64} {
  func.func @_hm_loss_kernel(%arg0: i32, %arg1: memref<8x1xf32, #tpu.memory_space<vmem>>, %arg2: memref<8x256xf32, #tpu.memory_space<vmem>>, %arg3: memref<8x256xf32, #tpu.memory_space<vmem>>, %arg4: memref<1x256xf32, #tpu.memory_space<vmem>>) attributes {dimension_semantics = [#tpu.dimension_semantics<parallel>], iteration_bounds = array<i64: 1>, scalar_prefetch = 0 : i64, scratch_operands = 0 : i64, tpu.core_type = #tpu.core_type<tc>, window_params = [{pipeline_mode = #tpu.pipeline_mode<synchronous>, transform_indices = @transform_0, window_bounds = array<i64: 8, 1>}, {transform_indices = @transform_1, window_bounds = array<i64: 8, 256>}, {transform_indices = @transform_2, window_bounds = array<i64: 8, 256>}, {transform_indices = @transform_3, window_bounds = array<i64: 1, 256>}]} {
    %c0 = arith.constant 0 : index
    %c0_0 = arith.constant 0 : index
    %0 = vector.load %arg1[%c0, %c0_0] : memref<8x1xf32, #tpu.memory_space<vmem>>, vector<8x1xf32>
    %c0_1 = arith.constant 0 : index
    %c0_2 = arith.constant 0 : index
    %1 = vector.load %arg2[%c0_1, %c0_2] : memref<8x256xf32, #tpu.memory_space<vmem>>, vector<8x256xf32>
    %c0_3 = arith.constant 0 : index
    %c0_4 = arith.constant 0 : index
    %2 = vector.load %arg3[%c0_3, %c0_4] : memref<8x256xf32, #tpu.memory_space<vmem>>, vector<8x256xf32>
    %3 = arith.subf %1, %2 : vector<8x256xf32>
    %4 = vector.broadcast %0 : vector<8x1xf32> to vector<8x256xf32>
    %5 = arith.mulf %3, %4 : vector<8x256xf32>
    %6 = math.absf %5 : vector<8x256xf32>
    %cst = arith.constant 1.000000e+00 : f32
    %7 = vector.broadcast %cst : f32 to vector<8x256xf32>
    %8 = arith.minimumf %6, %7 : vector<8x256xf32>
    %cst_5 = arith.constant 5.000000e-01 : f32
    %9 = vector.broadcast %cst_5 : f32 to vector<8x256xf32>
    %10 = arith.mulf %9, %8 : vector<8x256xf32>
    %11 = arith.subf %6, %10 : vector<8x256xf32>
    %12 = arith.mulf %8, %11 : vector<8x256xf32>
    %cst_6 = arith.constant dense<0.000000e+00> : vector<256xf32>
    %13 = vector.multi_reduction <add>, %12, %cst_6 [0] : vector<8x256xf32> to vector<256xf32>
    %14 = vector.shape_cast %13 : vector<256xf32> to vector<1x256xf32>
    %c0_7 = arith.constant 0 : index
    %c0_8 = arith.constant 0 : index
    %15 = vector.load %arg4[%c0_7, %c0_8] : memref<1x256xf32, #tpu.memory_space<vmem>>, vector<1x256xf32>
    tpu.vector_store %arg4[%c0_7, %c0_8], %14 {strides = array<i32>} : memref<1x256xf32, #tpu.memory_space<vmem>>, vector<1x256xf32>,
    return
  }
  func.func @transform_0(%arg0: i32) -> (i32, i32) {
    %c0_i32 = arith.constant 0 : i32
    %c0_i32_0 = arith.constant 0 : i32
    %c0_i32_1 = arith.constant 0 : i32
    return %c0_i32, %c0_i32_0 : i32, i32
  }
  func.func @transform_1(%arg0: i32) -> (i32, i32) {
    %c0_i32 = arith.constant 0 : i32
    %c0_i32_0 = arith.constant 0 : i32
    return %arg0, %c0_i32 : i32, i32
  }
  func.func @transform_2(%arg0: i32) -> (i32, i32) {
    %c0_i32 = arith.constant 0 : i32
    %c0_i32_0 = arith.constant 0 : i32
    return %arg0, %c0_i32 : i32, i32
  }
  func.func @transform_3(%arg0: i32) -> (i32, i32) {
    %c0_i32 = arith.constant 0 : i32
    %c0_i32_0 = arith.constant 0 : i32
    return %arg0, %c0_i32 : i32, i32
  }
}

</mosaic_0001>

<bundles_post_ra>
// kernel: tpu_custom_call.1
= control target key start
LH: loop header
LB: loop body
LE: loop exit
PB: predicated region body
PF: predicated region fallthrough
CT: control target
= control target key end

     0   :  { %8 = vsyncpa [#allocation3], 0  ;;  %s227_s0 = inlined_call_operand.vmem [shape: f32[8,1], index: 0, kind: input, shape index: {}]   ;;  %s228_s1 = inlined_call_operand.hbm [shape: f32[8,256], index: 1, kind: input, shape index: {}]   ;;  %s229_s2 = inlined_call_operand.hbm [shape: f32[8,256], index: 2, kind: input, shape index: {}]   ;;  %s230_s3 = inlined_call_operand.hbm [shape: f32[1,256], index: 3, kind: output, shape index: {}]  }
   0x1   :  { %9 = vsyncpa [#allocation6], 0 }
   0x2   :  { %10 = vsyncpa [#allocation4], 0  ;;  %s18_s14 = sshll.u32 %s228_s1, 4  ;;  %s191_s15 = smov [#allocation2]   ;;  %s19_s14 = int_to_ptr.hbm [resolvable:$true] %s18_s14 }
   0x3   :  { %s20_s16 = sshll.u32 %s191_s15, 4  ;;  %s29_s19 = sshll.u32 %s229_s2, 4  ;;  %s21_s16 = int_to_ptr.vmem [resolvable:$true] %s20_s16  ;;  %s30_s19 = int_to_ptr.hbm [resolvable:$true] %s29_s19 }
   0x4   :  { %23 = dma.hbm_to_vmem [thread:$0]  %s19_s14, 256, %s21_s16, [#allocation3]  }
   0x5   :  { %s192_s20 = smov [#allocation5]  }
   0x6   :  { %s31_s21 = sshll.u32 %s192_s20, 4  ;;  %s32_s21 = int_to_ptr.vmem [resolvable:$true] %s31_s21 }
   0x7   :  { %34 = dma.hbm_to_vmem [thread:$0]  %s30_s19, 256, %s32_s21, [#allocation6]  }
   0x8   :  { %185 = dma.done.wait [#allocation3], 256  }
   0x9   :  { %186 = vsyncadd [#allocation3], 4294967040 }
   0xa   :  { %187 = dma.done.wait [#allocation6], 256  }
   0xb   :  { %188 = vsyncadd [#allocation6], 4294967040  ;;  %v193_v0 = vmov 0   ;;  %v43_v1 = vld [vmem:[%s227_s0] sm:$0xff]  ;;  %v45_v3 = vld [vmem:[#allocation2 + $0x8] sm:$0xff]  ;;  %v85_v31 = vlaneseq  ;;  %s194_s0 = smov [#allocation7]  }
   0xc   :  { %112 = vset.pattern.permute.xlu0 %v193_v0  ;;  %v44_v2 = vld [vmem:[#allocation2] sm:$0xff]  ;;  %v46_v4 = vld [vmem:[#allocation5] sm:$0xff]  ;;  %v47_v5 = vld [vmem:[#allocation5 + $0x8] sm:$0xff]  ;;  %s95_s2 = sshll.u32 %s194_s0, 4  ;;  %s97_s25 = sshll.u32 %s230_s3, 4  ;;  %vm82_vm0 = vcmask 1040384   ;;  %s96_s2 = int_to_ptr.vmem [resolvable:$true] %s95_s2  ;;  %s98_s25 = int_to_ptr.hbm [resolvable:$true] %s97_s25 }
   0xd   :  { %52 = vperm.xlu0 %112, %v43_v1   ;;  %v48_v6 = vsub.f32 %v44_v2, %v46_v4  ;;  %v49_v7 = vsub.f32 %v45_v3, %v47_v5  ;;  %vm87_vm1 = vcmp.lt.s32.totalorder %v85_v31, 256 }
  0x7f   :  { %v53_v8 = vpop.permute.xlu0 %52 }
  0x80   :  { %v55_v9 = vmul.f32 %v53_v8, %v48_v6  ;;  %v56_v10 = vmul.f32 %v53_v8, %v49_v7 }
  0x82   :  { %v57_v11 = vand.u32 2147483647, %v55_v9  ;;  %v58_v12 = vand.u32 2147483647, %v56_v10 }
  0x84   :  { %v59_v13 = vmin.f32 %v57_v11, 1.0  ;;  %v60_v14 = vmin.f32 %v58_v12, 1.0 }
  0x86   :  { %v61_v15 = vmul.f32 0.5, %v59_v13  ;;  %v62_v16 = vmul.f32 0.5, %v60_v14 }
  0x88   :  { %v63_v17 = vsub.f32 %v57_v11, %v61_v15  ;;  %v64_v18 = vsub.f32 %v58_v12, %v62_v16 }
  0x8a   :  { %v65_v19 = vmul.f32 %v63_v17, %v59_v13  ;;  %v66_v20 = vmul.f32 %v64_v18, %v60_v14 }
  0x8c   :  { %v67_v21 = vrot.slane %v65_v19, 4  ;;  %v73_v22 = vrot.slane %v66_v20, 4 }
  0x8e   :  { %v68_v23 = vadd.f32 %v67_v21, %v65_v19  ;;  %v74_v24 = vadd.f32 %v73_v22, %v66_v20 }
  0x90   :  { %v69_v25 = vrot.slane %v68_v23, 2  ;;  %v75_v26 = vrot.slane %v74_v24, 2 }
  0x92   :  { %v70_v27 = vadd.f32 %v69_v25, %v68_v23  ;;  %v76_v28 = vadd.f32 %v75_v26, %v74_v24 }
  0x94   :  { %v71_v29 = vrot.slane %v70_v27, 1  ;;  %v77_v30 = vrot.slane %v76_v28, 1 }
  0x96   :  { %v78_v32 = vadd.f32 %v77_v30, %v76_v28  ;;  %v72_v33 = vadd.f32 %v71_v29, %v70_v27 }
  0x98   :  { %v81_v34 = vrot.slane %v78_v32, 7 }
  0x9a   :  { %v83_v35 = vsel %vm82_vm0, %v72_v33, %v81_v34 }
  0x9b   :  { %89 = vst.msk [vmem:[#allocation7] sm:$0x3] %vm87_vm1, %v83_v35 }
  0x9c   :  { %100 = dma.vmem_to_hbm [thread:$0]  %s96_s2, 32, %s98_s25, [#allocation4]  }
  0x9d   :  { %189 = dma.done.wait [#allocation4], 32  }
  0x9e   :  { %190 = vsyncadd [#allocation4], 4294967264 }
  0x9f   :  { %105 = vsyncpa [#allocation3], 1 }
  0xa0   :  { %106 = vsyncpa [#allocation6], 1 }
  0xa1   :  { %107 = vsyncpa [#allocation4], 1 }

</bundles_post_ra>
